<compile_context>
chip_gen: v7x
topology: tpu7x:2x2x1
jax: 0.10.0
libtpu: 0.0.40
codegen_flags: <defaults>
</compile_context>

<pallas_src>
import functools

import jax
import jax.numpy as jnp
from jax.experimental import pallas as pl
from jax.experimental.pallas import tpu as pltpu


# v7x has only 64 MiB physical VMEM (vs 128 on v5e/v6e); 48 MiB scoped limit
# leaves headroom while lifting the 16/32 MiB scoped defaults on v5e/v6e.
VMEM_LIMIT_BYTES = 48 * 1024 * 1024


def _pick_tq(n):
    """Target-row tile size: full graph when small, else 512 rows so the
    double-buffered (Tq, N) adjacency slab + (Tq, N) logits stay well inside
    the v7x VMEM budget.  pl.cdiv + BlockSpec masking handle a ragged tail."""
    return n if n <= 512 else 512


# ----------------------------- Pallas kernels ------------------------------ #

def src_proj_kernel(x_ref, w_ref, xs_ref, asrc_ref, *, hc):
    """Per-layer prologue: fused source-side projection.
       [xs_all | alpha_src] = x @ [W_src | W_src@a_src]   (no bias in lin_src)."""
    x = x_ref[...].astype(jnp.bfloat16)                       # bf16 MXU operand
    proj = jnp.dot(x, w_ref[...], preferred_element_type=jnp.float32)  # [Tq, hc+H]
    xs_ref[...] = proj[:, :hc].astype(jnp.bfloat16)           # messages, bf16
    asrc_ref[...] = proj[:, hc:]                               # alpha_src, f32


def pallas_src_proj(x, w_src_aug, hc, heads):
    N, Fin = x.shape
    tq = _pick_tq(N)
    return pl.pallas_call(
        functools.partial(src_proj_kernel, hc=hc),
        out_shape=(jax.ShapeDtypeStruct((N, hc), jnp.bfloat16),
                   jax.ShapeDtypeStruct((N, heads), jnp.float32)),
        grid=(pl.cdiv(N, tq),),
        in_specs=[
            pl.BlockSpec((tq, Fin), lambda i: (i, 0)),
            pl.BlockSpec((Fin, hc + heads), lambda i: (0, 0)),
        ],
        out_specs=(pl.BlockSpec((tq, hc), lambda i: (i, 0)),
                   pl.BlockSpec((tq, heads), lambda i: (i, 0))),
        compiler_params=pltpu.CompilerParams(
            dimension_semantics=("parallel",),
            vmem_limit_bytes=VMEM_LIMIT_BYTES),
    )(x, w_src_aug)


def gat_layer_kernel(x_ref, w_ref, b_ref, xs_ref, asrcT_ref, cbias_ref,
                     gamma_ref, beta_ref, mean_ref, var_ref, adj_ref,
                     *rest, heads, ch, fuse_out):
    """Row-tiled fused GAT layer: fused target-side projection -> per-head
    masked-softmax attention -> scratch-slab head concat -> +bias +skip ->
    BatchNorm(eval) -> ReLU [-> fused fc_out on the last layer]."""
    if fuse_out:
        wo_ref, bo_ref, o_ref, conv_ref = rest
    else:
        o_ref, conv_ref = rest
    hc = heads * ch

    # Fused target-side projection: [alpha_dst | skip] = x_tile @ [W_dst@a_dst | W_lin] + b
    x = x_ref[...].astype(jnp.bfloat16)                               # [Tq, Fin]
    proj = (jnp.dot(x, w_ref[...], preferred_element_type=jnp.float32)
            + b_ref[...])                                             # [Tq, H+hc]
    alpha_dst = proj[:, :heads]                                       # [Tq, H]
    skip = proj[:, heads:]                                            # [Tq, hc]

    # int8 adjacency tile -> boolean mask (4x smaller DMA than f32 adj)
    mask = adj_ref[...].astype(jnp.float32) > 0.0                     # [Tq, N]

    xs = xs_ref[...]                                                  # [N, hc] bf16
    asrcT = asrcT_ref[...]                                            # [H, N] f32

    for h in range(heads):                        # static head loop
        lo, hi = h * ch, (h + 1) * ch
        # logits[i, j] = leaky_relu(alpha_dst[i, h] + alpha_src[j, h], 0.2)
        logits = alpha_dst[:, h:h + 1] + asrcT[h:h + 1, :]            # [Tq, N]
        logits = jnp.where(logits > 0, logits, 0.2 * logits)
        # masked softmax over incoming edges (self loops guarantee a finite
        # row max, so exp underflows to 0 on masked entries — no re-mask).
        logits = jnp.where(mask, logits, -1e30)
        m = jnp.max(logits, axis=1, keepdims=True)
        p = jnp.exp(logits - m)
        denom = jnp.sum(p, axis=1, keepdims=True)
        attn = p * pl.reciprocal(denom, approx=True)                  # EUP divide
        # out_h[i] = sum_j attn[i, j] * xs_h[j]   (bf16 MXU operands, f32 acc)
        conv_ref[:, lo:hi] = jnp.dot(attn.astype(jnp.bfloat16), xs[:, lo:hi],
                                     preferred_element_type=jnp.float32)

    # conv + conv_bias + linear skip -> BatchNorm1d(eval, eps=1e-5) -> ReLU
    y = conv_ref[...] + cbias_ref[...] + skip
    y = ((y - mean_ref[...]) * jax.lax.rsqrt(var_ref[...] + 1e-5)
         * gamma_ref[...] + beta_ref[...])
    y = jnp.maximum(y, 0.0)

    if fuse_out:
        # dropout(p=0.5, eval) = identity; fc_out fused into the epilogue.
        o_ref[...] = (jnp.dot(y.astype(jnp.bfloat16), wo_ref[...],
                              preferred_element_type=jnp.float32) + bo_ref[...])
    else:
        o_ref[...] = y


def pallas_gat_layer(x, w_dst_aug, b_dst_aug, xs_all, asrcT, conv_bias,
                     gamma, beta, mean, var, adj, heads, ch,
                     w_out=None, b_out=None):
    # TODO(synk): for very large N switch to a flash-style online softmax over
    # source-column tiles (VMEM O(Tq*Tk)) and a scalar-prefetched CSR neighbor
    # list for sparse graphs; pad hc / num_classes to 128 lanes if the masked
    # output stores ever show up in the profile.
    N, Fin = x.shape
    hc = heads * ch
    fuse_out = w_out is not None
    out_dim = w_out.shape[1] if fuse_out else hc
    tq = _pick_tq(N)
    inv = lambda i: (0, 0)

    in_specs = [
        pl.BlockSpec((tq, Fin), lambda i: (i, 0)),       # x row tile
        pl.BlockSpec((Fin, heads + hc), inv),            # [W_dst@a_dst | W_lin] (bf16)
        pl.BlockSpec((1, heads + hc), inv),              # fused bias (0 | b_lin)
        pl.BlockSpec((N, hc), inv),                      # xs_all (grid-invariant, bf16)
        pl.BlockSpec((heads, N), inv),                   # alpha_src^T (grid-invariant)
        pl.BlockSpec((1, hc), inv),                      # GATConv bias
        pl.BlockSpec((1, hc), inv),                      # bn gamma
        pl.BlockSpec((1, hc), inv),                      # bn beta
        pl.BlockSpec((1, hc), inv),                      # bn running mean
        pl.BlockSpec((1, hc), inv),                      # bn running var
        # largest per-step DMA; default double-buffering (raise via
        # pipeline_mode=pl.Buffered(3) if the slab DMA is exposed in traces)
        pl.BlockSpec((tq, N), lambda i: (i, 0)),         # int8 adjacency tile
    ]
    args = [x, w_dst_aug, b_dst_aug, xs_all, asrcT, conv_bias,
            gamma, beta, mean, var, adj]
    if fuse_out:
        in_specs += [pl.BlockSpec((hc, out_dim), inv),   # fc_out weight (bf16)
                     pl.BlockSpec((1, out_dim), inv)]    # fc_out bias
        args += [w_out, b_out]

    return pl.pallas_call(
        functools.partial(gat_layer_kernel, heads=heads, ch=ch, fuse_out=fuse_out),
        out_shape=jax.ShapeDtypeStruct((N, out_dim), jnp.float32),
        grid=(pl.cdiv(N, tq),),
        in_specs=in_specs,
        out_specs=pl.BlockSpec((tq, out_dim), lambda i: (i, 0)),
        scratch_shapes=[pltpu.VMEM((tq, hc), jnp.float32)],   # head-concat slab
        compiler_params=pltpu.CompilerParams(
            dimension_semantics=("parallel",),        # shards row tiles on v7x megacore
            vmem_limit_bytes=VMEM_LIMIT_BYTES),
    )(*args)


# ------------------------------ model wrapper ------------------------------ #

def init_params(key, in_dim, hidden_dim, num_classes, heads, num_layers):
    C = hidden_dim
    hc = heads * C
    params = {"layers": []}
    fin = in_dim
    for _ in range(num_layers):
        key, *ks = jax.random.split(key, 8)
        w_src = 0.1 * jax.random.normal(ks[0], (fin, hc), jnp.float32)
        w_dst = 0.1 * jax.random.normal(ks[1], (fin, hc), jnp.float32)
        att_src = 0.1 * jax.random.normal(ks[2], (heads, C), jnp.float32)
        att_dst = 0.1 * jax.random.normal(ks[3], (heads, C), jnp.float32)
        conv_bias = 0.1 * jax.random.normal(ks[4], (1, hc), jnp.float32)
        w_lin = 0.1 * jax.random.normal(ks[5], (fin, hc), jnp.float32)
        b_lin = 0.1 * jax.random.normal(ks[6], (1, hc), jnp.float32)

        # Fold attention vectors into the projections (host-side, once):
        #   w_alpha_src[:, h] = W_src_h @ a_src_h, so alpha_src = x @ w_alpha_src.
        w_alpha_src = jnp.einsum("fhc,hc->fh", w_src.reshape(fin, heads, C), att_src)
        w_alpha_dst = jnp.einsum("fhc,hc->fh", w_dst.reshape(fin, heads, C), att_dst)

        params["layers"].append(dict(
            # source side: [W_src | W_src@a_src]  -> xs_all, alpha_src
            w_src_aug=jnp.concatenate([w_src, w_alpha_src], axis=1).astype(jnp.bfloat16),
            # target side: [W_dst@a_dst | W_lin]  -> alpha_dst, linear skip
            w_dst_aug=jnp.concatenate([w_alpha_dst, w_lin], axis=1).astype(jnp.bfloat16),
            # lin_dst has no bias (PyG GATConv); only the skip Linear does
            b_dst_aug=jnp.concatenate(
                [jnp.zeros((1, heads), jnp.float32), b_lin], axis=1),
            conv_bias=conv_bias,
            bn_gamma=jnp.ones((1, hc), jnp.float32),
            bn_beta=jnp.zeros((1, hc), jnp.float32),
            bn_mean=jnp.zeros((1, hc), jnp.float32),   # running stats (eval mode)
            bn_var=jnp.ones((1, hc), jnp.float32),
        ))
        fin = hc
    key, k1, k2 = jax.random.split(key, 3)
    params["w_out"] = (0.1 * jax.random.normal(k1, (fin, num_classes), jnp.float32)
                       ).astype(jnp.bfloat16)
    params["b_out"] = 0.1 * jax.random.normal(k2, (1, num_classes), jnp.float32)
    return params


def gat_forward(x, adj, params, hidden_dim, heads):
    hc = hidden_dim * heads
    n_layers = len(params["layers"])
    h = x
    for li, layer in enumerate(params["layers"]):
        last = li == n_layers - 1
        # Prologue: source messages xs_all [N, hc] (bf16) + alpha_src [N, H].
        xs_all, alpha_src = pallas_src_proj(h, layer["w_src_aug"], hc, heads)
        # Layout plumbing only (tiny [N, H] transpose so each head's alpha_src
        # is a lane-dense [1, N] row inside the kernel).
        asrcT = jnp.transpose(alpha_src)
        h = pallas_gat_layer(h, layer["w_dst_aug"], layer["b_dst_aug"],
                             xs_all, asrcT, layer["conv_bias"],
                             layer["bn_gamma"], layer["bn_beta"],
                             layer["bn_mean"], layer["bn_var"], adj,
                             heads, hidden_dim,
                             w_out=params["w_out"] if last else None,
                             b_out=params["b_out"] if last else None)
        # F.dropout(p=0.5, training=False) -> identity in eval mode
    return h


# ---------------------------------- main ----------------------------------- #

if __name__ == "__main__":
    N, IN_DIM, HIDDEN, HEADS, CLASSES, LAYERS, E = 16, 12, 8, 3, 5, 2, 40

    key = jax.random.PRNGKey(0)
    kx, ke1, ke2, kp = jax.random.split(key, 4)

    x = jax.random.normal(kx, (N, IN_DIM), jnp.float32)

    # edge_index: [2, E] (row 0 = source, row 1 = target); dense int8 adjacency
    # mask with self loops (GATConv default add_self_loops=True).
    src = jax.random.randint(ke1, (E,), 0, N)
    dst = jax.random.randint(ke2, (E,), 0, N)
    adj = jnp.zeros((N, N), jnp.int8).at[dst, src].set(1)
    adj = jnp.maximum(adj, jnp.eye(N, dtype=jnp.int8))

    params = init_params(kp, IN_DIM, HIDDEN, CLASSES, HEADS, LAYERS)

    out = gat_forward(x, adj, params, HIDDEN, HEADS)
    out = jax.block_until_ready(out)
    assert out.shape == (N, CLASSES)
    print("KERNEL_OK")
</pallas_src>

<mosaic_0001>
module attributes {stable_mosaic.version = 11 : i64} {
  func.func @src_proj_kernel(%arg0: i32, %arg1: memref<16x12xf32, #tpu.memory_space<vmem>>, %arg2: memref<12x27xbf16, #tpu.memory_space<vmem>>, %arg3: memref<16x24xbf16, #tpu.memory_space<vmem>>, %arg4: memref<16x3xf32, #tpu.memory_space<vmem>>) attributes {dimension_semantics = [#tpu.dimension_semantics<parallel>], iteration_bounds = array<i64: 1>, scalar_prefetch = 0 : i64, scratch_operands = 0 : i64, tpu.core_type = #tpu.core_type<tc>, window_params = [{transform_indices = @transform_0, window_bounds = array<i64: 16, 12>}, {pipeline_mode = #tpu.pipeline_mode<synchronous>, transform_indices = @transform_1, window_bounds = array<i64: 12, 27>}, {transform_indices = @transform_2, window_bounds = array<i64: 16, 24>}, {transform_indices = @transform_3, window_bounds = array<i64: 16, 3>}]} {
    %c0 = arith.constant 0 : index
    %c0_0 = arith.constant 0 : index
    %0 = vector.load %arg1[%c0, %c0_0] : memref<16x12xf32, #tpu.memory_space<vmem>>, vector<16x12xf32>
    %1 = arith.truncf %0 : vector<16x12xf32> to vector<16x12xbf16>
    %c0_1 = arith.constant 0 : index
    %c0_2 = arith.constant 0 : index
    %2 = vector.load %arg2[%c0_1, %c0_2] : memref<12x27xbf16, #tpu.memory_space<vmem>>, vector<12x27xbf16>
    %cst = arith.constant dense<0.000000e+00> : vector<16x27xf32>
    %3 = tpu.matmul %1, %2, %cst {dimension_numbers = #tpu.dot_dimension_numbers<[1], [0], [0], [1], [0, 0, 1, 1], [], []>} : vector<16x12xbf16>, vector<12x27xbf16>, vector<16x27xf32> -> vector<16x27xf32>
    %4 = vector.extract_strided_slice %3 {offsets = [0, 0], sizes = [16, 24], strides = [1, 1]} : vector<16x27xf32> to vector<16x24xf32>
    %5 = arith.truncf %4 : vector<16x24xf32> to vector<16x24xbf16>
    %c0_3 = arith.constant 0 : index
    %c0_4 = arith.constant 0 : index
    %6 = vector.load %arg3[%c0_3, %c0_4] : memref<16x24xbf16, #tpu.memory_space<vmem>>, vector<16x24xbf16>
    tpu.vector_store %arg3[%c0_3, %c0_4], %5 {strides = array<i32>} : memref<16x24xbf16, #tpu.memory_space<vmem>>, vector<16x24xbf16>,
    %7 = vector.extract_strided_slice %3 {offsets = [0, 24], sizes = [16, 3], strides = [1, 1]} : vector<16x27xf32> to vector<16x3xf32>
    %c0_5 = arith.constant 0 : index
    %c0_6 = arith.constant 0 : index
    %8 = vector.load %arg4[%c0_5, %c0_6] : memref<16x3xf32, #tpu.memory_space<vmem>>, vector<16x3xf32>
    tpu.vector_store %arg4[%c0_5, %c0_6], %7 {strides = array<i32>} : memref<16x3xf32, #tpu.memory_space<vmem>>, vector<16x3xf32>,
    return
  }
  func.func @transform_0(%arg0: i32) -> (i32, i32) {
    %c0_i32 = arith.constant 0 : i32
    %c0_i32_0 = arith.constant 0 : i32
    return %arg0, %c0_i32 : i32, i32
  }
  func.func @transform_1(%arg0: i32) -> (i32, i32) {
    %c0_i32 = arith.constant 0 : i32
    %c0_i32_0 = arith.constant 0 : i32
    %c0_i32_1 = arith.constant 0 : i32
    return %c0_i32, %c0_i32_0 : i32, i32
  }
  func.func @transform_2(%arg0: i32) -> (i32, i32) {
    %c0_i32 = arith.constant 0 : i32
    %c0_i32_0 = arith.constant 0 : i32
    return %arg0, %c0_i32 : i32, i32
  }
  func.func @transform_3(%arg0: i32) -> (i32, i32) {
    %c0_i32 = arith.constant 0 : i32
    %c0_i32_0 = arith.constant 0 : i32
    return %arg0, %c0_i32 : i32, i32
  }
}

</mosaic_0001>

<bundles_post_ra>
// kernel: tpu_custom_call.1
= control target key start
LH: loop header
LB: loop body
LE: loop exit
PB: predicated region body
PF: predicated region fallthrough
CT: control target
= control target key end

     0   :  { %9 = vsyncpa [#allocation3], 0  ;;  %s321_s0 = inlined_call_operand.hbm [shape: f32[16,12], index: 0, kind: input, shape index: {}]   ;;  %s322_s1 = inlined_call_operand.hbm [shape: bf16[12,27], index: 1, kind: input, shape index: {}]   ;;  %s323_s2 = inlined_call_operand.hbm [shape: bf16[16,24], index: 2, kind: output, shape index: {0}]   ;;  %s324_s3 = inlined_call_operand.vmem [shape: f32[16,3], index: 3, kind: output, shape index: {1}]  }
   0x1   :  { %10 = vsyncpa [#allocation6], 0 }
   0x2   :  { %11 = vsyncpa [#allocation4], 0  ;;  %s243_s12 = smov [#allocation2]   ;;  %s171_s16 = scalar_lea.hbm %s321_s0, 256 }
   0x3   :  { %s17_s13 = sshll.u32 %s243_s12, 4  ;;  %p172_p0 = scmp.ne.s32.totalorder %s321_s0, %s171_s16  ;;  %s18_s13 = int_to_ptr.vmem [resolvable:$true] %s17_s13 }
   0x4   :  { %p175_p1 = scmp.lt.u32.totalorder %s171_s16, %s321_s0 }
   0x6   :  { %p177_p2 = pnand %p175_p1, %p172_p0 }
   0x8   :  { %180 = shalt.err (!%p177_p2)
}
   0x9   :  { %s181_s21 = scalar_lea.vmem %s18_s13, 256  ;;  %p186_p4 = scmp.lt.s32.totalorder %s18_s13, %s18_s13 }
   0xa   :  { %p182_p3 = scmp.ne.s32.totalorder %s18_s13, %s181_s21  ;;  %p187_p5 = scmp.lt.s32.totalorder %s181_s21, %s181_s21 }
   0xc   :  { %p188_p6 = por %p187_p5, %p186_p4 }
   0xe   :  { %p189_p7 = pnand %p188_p6, %p182_p3 }
  0x10   :  { %192 = shalt.err (!%p189_p7)
}
  0x11   :  { %s244_s22 = smov 128   ;;  %s245_s23 = smov 8  }
  0x12   :  { %23 = dma.hbm_to_vmem [thread:$0]  %s321_s0, 256, %s18_s13, [#allocation3], %s244_s22, %s244_s22, %s245_s23  }
  0x13   :  { %s246_s26 = smov [#allocation5]   ;;  %s193_s30 = scalar_lea.hbm %s322_s1, 128 }
  0x14   :  { %s29_s27 = sshll.u32 %s246_s26, 4  ;;  %p194_p8 = scmp.ne.s32.totalorder %s322_s1, %s193_s30  ;;  %s30_s27 = int_to_ptr.vmem [resolvable:$true] %s29_s27 }
  0x15   :  { %p197_p9 = scmp.lt.u32.totalorder %s193_s30, %s322_s1 }
  0x17   :  { %p199_p10 = pnand %p197_p9, %p194_p8 }
  0x19   :  { %202 = shalt.err (!%p199_p10)
}
  0x1a   :  { %s203_s8 = scalar_lea.vmem %s30_s27, 128  ;;  %p208_p12 = scmp.lt.s32.totalorder %s30_s27, %s30_s27 }
  0x1b   :  { %p204_p11 = scmp.ne.s32.totalorder %s30_s27, %s203_s8  ;;  %p209_p13 = scmp.lt.s32.totalorder %s203_s8, %s203_s8 }
  0x1d   :  { %p210_p0 = por %p209_p13, %p208_p12 }
  0x1f   :  { %p211_p1 = pnand %p210_p0, %p204_p11 }
  0x21   :  { %214 = shalt.err (!%p211_p1)
}
  0x22   :  { %s247_s0 = smov 64   ;;  %s248_s9 = smov 4  }
  0x23   :  { %35 = dma.hbm_to_vmem [thread:$0]  %s322_s1, 128, %s30_s27, [#allocation6], %s247_s0, %s247_s0, %s248_s9  }
  0x24   :  { %237 = dma.done.wait [#allocation3], 256  }
  0x25   :  { %238 = vsyncadd [#allocation3], 4294967040 }
  0x26   :  { %239 = dma.done.wait [#allocation6], 128  }
  0x27   :  { %240 = vsyncadd [#allocation6], 4294967168  ;;  %v249_v0 = vmov 0.0   ;;  %vm250_vm0 = vmmov 0   ;;  %vm57_vm1 = vcmask 1045504   ;;  %v43_v2 = vld [vmem:[#allocation2] sm:$0xff] }
  0x28   :  { %154 = vmatprep.subr.bf16.mxu0 %v249_v0  ;;  %156 = vmatprep.mubr.msk.bf16.mxu0 %vm250_vm0, %v249_v0  ;;  %v170_v1 = vld [vmem:[#allocation5] sm:$0x3f]   ;;  %v44_v3 = vld [vmem:[#allocation2 + $0x8] sm:$0xff]  ;;  %vm53_vm2 = vcmask 97280   ;;  %vm110_vm3 = vcmask 191488   ;;  %s251_s1 = smov [#allocation7]  }
  0x29   :  { %v59_v4 = vsel %vm57_vm1, %v170_v1, 0  ;;  %v45_v5 = vpack.c.bf16 %v44_v3, %v43_v2  ;;  %s129_s12 = sshll.u32 %s251_s1, 4  ;;  %s252_s13 = smov 104   ;;  %s130_s12 = int_to_ptr.vmem [resolvable:$true] %s129_s12 }
  0x2a   :  { %155 = vmatpush3.bf16.msra.mxu0 %v59_v4  ;;  %s215_s14 = scalar_lea.vmem %s130_s12, 128  ;;  %p220_p3 = scmp.lt.s32.totalorder %s130_s12, %s130_s12 }
  0x2b   :  { %p216_p2 = scmp.ne.s32.totalorder %s130_s12, %s215_s14  ;;  %p221_p4 = scmp.lt.s32.totalorder %s215_s14, %s215_s14 }
  0x2d   :  { %157 = vmatmul.mubr.msk.bf16.vlgmr.msra.gmra.mrb[0].mxu0 %vm53_vm2, %v45_v5  ;;  %p222_p5 = por %p221_p4, %p220_p3 }
  0x2f   :  { %p223_p6 = pnand %p222_p5, %p216_p2 }
 0x100   :  { %v95_v6 = vpop.f32.mrb[0].mxu0 }
 0x101   :  { %v150_v7 = vpack.c.bf16 %v95_v6, %v95_v6  ;;  %115 = vrot.lane.b32.xlu0 %v95_v6, %s252_s13  ;;  %v158_v8 = vpop.f32.mrb[1].mxu0 }
 0x102   :  { %v98_v9 = vpop.f32.mrb[2].mxu0 }
 0x103   :  { %v151_v10 = vpack.c.bf16 %v98_v9, %v98_v9  ;;  %v159_v11 = vpop.f32.mrb[3].mxu0  ;;  %111 = vst.msk [vmem:[#allocation7] sm:$0xf] %vm110_vm3, %v150_v7 }
 0x105   :  { %117 = vrot.lane.b32.xlu0 %v98_v9, %s252_s13  ;;  %112 = vst.msk [vmem:[#allocation7 + $0x4] sm:$0xf] %vm110_vm3, %v151_v10 }
 0x106   :  { %226 = shalt.err (!%p223_p6)
}
 0x107   :  { %s227_s17 = scalar_lea.hbm %s323_s2, 128 }
 0x108   :  { %p228_p7 = scmp.ne.s32.totalorder %s323_s2, %s227_s17  ;;  %p231_p8 = scmp.lt.u32.totalorder %s227_s17, %s323_s2 }
 0x10a   :  { %p233_p9 = pnand %p231_p8, %p228_p7 }
 0x10c   :  { %236 = shalt.err (!%p233_p9)
}
 0x10d   :  { %135 = dma.vmem_to_hbm [thread:$0]  %s130_s12, 128, %s323_s2, [#allocation4], %s247_s0, %s247_s0, %s248_s9   ;;  %vm121_vm4 = vcmask 23552  }
 0x173   :  { %v116_v12 = vpop.permute.xlu0 %115 }
 0x174   :  { %122 = vst.msk [vmem:[%s324_s3] sm:$0xff] %vm121_vm4, %v116_v12 }
 0x177   :  { %v118_v13 = vpop.permute.xlu0 %117 }
 0x178   :  { %123 = vst.msk [vmem:[%s324_s3 + $0x8] sm:$0xff] %vm121_vm4, %v118_v13 }
 0x179   :  { %241 = dma.done.wait [#allocation4], 128  }
 0x17a   :  { %242 = vsyncadd [#allocation4], 4294967168 }
 0x17b   :  { %143 = vsyncpa [#allocation3], 1 }
 0x17c   :  { %144 = vsyncpa [#allocation6], 1 }
 0x17d   :  { %145 = vsyncpa [#allocation4], 1 }

</bundles_post_ra>
